<compile_context>
chip_gen: v6e
topology: v6e:2x2x1
jax: 0.10.0
libtpu: 0.0.40
codegen_flags: <defaults>
</compile_context>

<pallas_src>
import jax
import jax.numpy as jnp
from jax.experimental import pallas as pl
from jax.experimental.pallas import tpu as pltpu


def clim_kernel(v_ref, t_ref, wl_ref, wo_ref, p_ref, out_ref):
    """CLIM forward, single grid point.

    v_ref  : (B*Cv, HW)     vision features, channel-major, sublane-dense
    t_ref  : (Dt+1, B*T)    text features^T with a trailing ones row (bias fold)
    wl_ref : (E, Dt+1)      Linear weight (PyTorch layout) with bias column
    wo_ref : (Cv, E)        1x1 conv (E -> Cv) weight
    p_ref  : (E, Cv+3+B)    packed: [wv | bv | gamma | beta | 1/cnt_0 .. 1/cnt_{B-1}]
    out_ref: (B*Cv, HW)
    """
    BC, HW = v_ref.shape
    Cv, E = wo_ref.shape
    B = BC // Cv
    BT = t_ref.shape[1]
    T = BT // B

    p = p_ref[...]                                           # (E, Cv+3+B)
    v = v_ref[...]                                           # (B*Cv, HW)

    # ---- t_trans: Linear(Dt -> E) + Tanh as ONE MXU dot, bias folded into K.
    # Output is column-major (E, B*T), so the sentence feature below stays
    # column-oriented and needs no lane->sublane relayout.
    lang = jnp.tanh(jnp.dot(wl_ref[...], t_ref[...],
                            preferred_element_type=jnp.float32))     # (E, B*T)

    bv = p[:, Cv:Cv + 1]                                     # (E, 1)

    # ---- v_trans + sentence gating, per batch (B is a tiny static constant).
    # Cv -> E 1x1 conv as Cv unrolled VPU rank-1 MACs (K = Cv = 4 would waste
    # the MXU K dim), with the bias folded into the first term.
    x_parts = []
    for b in range(B):
        acc = p[:, 0:1] * v[b * Cv:b * Cv + 1, :] + bv       # (E,1)*(1,HW)+(E,1)
        for c in range(1, Cv):                               # fully unrolled
            acc = acc + p[:, c:c + 1] * v[b * Cv + c:b * Cv + c + 1, :]
        vis_b = jnp.tanh(acc)                                # (E, HW)
        # sent_feat = sum_T(lang) / sum_T(mask): padded tokens stay in the
        # numerator (matches the PyTorch module); 1/count is precomputed and
        # packed as an (E,1) column -> plain elementwise multiply, no bcast.
        sent_b = (jnp.sum(lang[:, b * T:(b + 1) * T], axis=1, keepdims=True)
                  * p[:, Cv + 3 + b:Cv + 4 + b])             # (E, 1)
        x_parts.append(jnp.maximum(vis_b * sent_b, 0.0))     # ReLU(vis * sent)
    x_all = jnp.concatenate(x_parts, axis=1)                 # (E, B*HW), lane-aligned

    # ---- f_out conv: E -> Cv as ONE 2-D MXU dot, batch folded into N. ------
    # NOTE: the conv bias `bo` is intentionally omitted -- training-mode BN
    # subtracts the per-channel batch mean, which cancels a constant bias.
    y = jnp.dot(wo_ref[...], x_all,
                preferred_element_type=jnp.float32)          # (Cv, B*HW)

    # ---- BatchNorm2d, training-mode batch stats (biased var), single pass. -
    # E[y^2] - E[y]^2 is clamped at 0; fine in f32 at these scales.  At
    # production sizes offload these lane reductions to the MXU (ones-vector
    # matmul) and/or use two-pass statistics.
    inv_n = 1.0 / float(B * HW)
    s1 = jnp.sum(y, axis=1, keepdims=True)                   # (Cv, 1)
    s2 = jnp.sum(y * y, axis=1, keepdims=True)               # (Cv, 1)
    mean = s1 * inv_n
    var = jnp.maximum(s2 * inv_n - mean * mean, 0.0)
    scale = p[0:Cv, Cv + 1:Cv + 2] * jax.lax.rsqrt(var + 1e-5)   # gamma * rsqrt
    shift = p[0:Cv, Cv + 2:Cv + 3] - mean * scale                # beta - mean*scale

    # ---- BN affine + ReLU + residual + L2-normalize(channel), per batch. ---
    for b in range(B):
        yb = jnp.maximum(y[:, b * HW:(b + 1) * HW] * scale + shift, 0.0)  # (Cv, HW)
        z = v[b * Cv:(b + 1) * Cv, :] + yb
        ssq = jnp.sum(z * z, axis=0, keepdims=True)          # (1, HW)
        # z * rsqrt(max(ssq, eps^2)) == z / max(||z||_2, eps), eps = 1e-12
        out_ref[b * Cv:(b + 1) * Cv, :] = z * jax.lax.rsqrt(jnp.maximum(ssq, 1e-24))


def clim_forward(v_feat, t_feat, t_mask, params):
    """v_feat: (B, Cv, H, W) NCHW, t_feat: (B, T, Dt), t_mask: (B, T, 1)."""
    B, Cv, H, W = v_feat.shape
    _, T, Dt = t_feat.shape
    E = params['wv'].shape[0]
    HW = H * W

    # Vision: free NCHW view -> sublane-dense (B*Cv, HW) = (8, 256).
    v2d = v_feat.reshape(B * Cv, HW).astype(jnp.float32)

    # Text: transpose so the kernel works fully column-major (E on sublanes),
    # and append a ones row so the Linear bias folds into the matmul K dim.
    t2 = jnp.transpose(t_feat.reshape(B * T, Dt).astype(jnp.float32))   # (Dt, B*T)
    t_aug = jnp.concatenate([t2, jnp.ones((1, B * T), jnp.float32)], axis=0)
    wl = jnp.concatenate([params['wt'], params['bt']], axis=1)          # (E, Dt+1)

    # One packed parameter array (one DMA instead of six tiny padded ones):
    # columns = [wv (Cv) | bv | gamma | beta | 1/cnt per batch].  The mask
    # tensor itself never enters the kernel -- only the reciprocal counts.
    inv_cnt = 1.0 / jnp.sum(t_mask.astype(jnp.float32), axis=(1, 2))    # (B,)

    def pad_col(x):
        x = x.reshape(-1, 1).astype(jnp.float32)
        return jnp.pad(x, ((0, E - x.shape[0]), (0, 0)))

    packed = jnp.concatenate(
        [params['wv'].astype(jnp.float32),
         params['bv'].astype(jnp.float32),
         pad_col(params['gamma']),
         pad_col(params['beta']),
         jnp.broadcast_to(inv_cnt[None, :], (E, B))], axis=1)           # (E, Cv+3+B)

    vmem = pl.BlockSpec(memory_space=pltpu.MemorySpace.VMEM)
    # Single grid point, whole arrays in VMEM (a few hundred KiB total).
    # At production sizes: pixel-tiled grid, dimension_semantics=("parallel",)
    # for the v7x second TensorCore, two-pass BN stats, bf16 MXU operands.
    out = pl.pallas_call(
        clim_kernel,
        out_shape=jax.ShapeDtypeStruct((B * Cv, HW), jnp.float32),
        in_specs=[vmem] * 5,
        out_specs=vmem,
    )(v2d, t_aug, wl, params['wo'].astype(jnp.float32), packed)
    return out.reshape(B, Cv, H, W)


def init_params(key, v_inp_dim, t_inp_dim, embed_dim):
    """Deterministic PyTorch-style (uniform +/- 1/sqrt(fan_in)) init, native layouts."""
    ks = jax.random.split(key, 6)

    def u(k, shape, fan_in):
        b = 1.0 / float(fan_in) ** 0.5
        return jax.random.uniform(k, shape, jnp.float32, -b, b)

    return dict(
        # Conv2d(Cv, E, 1): weight (E, Cv, 1, 1) stored squeezed as (E, Cv)
        wv=u(ks[0], (embed_dim, v_inp_dim), v_inp_dim),
        bv=u(ks[1], (embed_dim, 1), v_inp_dim),
        # Linear(Dt, E): weight in PyTorch layout (E, Dt), bias as (E, 1)
        wt=u(ks[2], (embed_dim, t_inp_dim), t_inp_dim),
        bt=u(ks[3], (embed_dim, 1), t_inp_dim),
        # Conv2d(E, Cv, 1): weight (Cv, E, 1, 1) stored squeezed as (Cv, E)
        wo=u(ks[4], (v_inp_dim, embed_dim), embed_dim),
        # conv bias: used only by the reference (cancelled by the BN mean)
        bo=u(ks[5], (v_inp_dim, 1), embed_dim),
        # BatchNorm2d(Cv) affine params
        gamma=jnp.ones((v_inp_dim, 1), jnp.float32),
        beta=jnp.zeros((v_inp_dim, 1), jnp.float32),
    )


def clim_reference(v_feat, t_feat, t_mask, params):
    """Pure-JAX reference of the PyTorch module (keeps the `bo` conv bias)."""
    B, Cv, H, W = v_feat.shape
    v = v_feat.reshape(B, Cv, H * W)
    vis = jnp.tanh(jnp.einsum('ec,bcp->bep', params['wv'], v)
                   + params['bv'][None])                               # (B, E, HW)
    lang = jnp.tanh(jnp.einsum('btd,ed->bte', t_feat, params['wt'])
                    + params['bt'][:, 0][None, None])                  # (B, T, E)
    sent = jnp.sum(lang, axis=1) / jnp.sum(t_mask, axis=1)             # (B, E)
    x = jnp.maximum(vis * sent[:, :, None], 0.0)
    y = jnp.einsum('ce,bep->bcp', params['wo'], x) + params['bo'][None]
    mean = jnp.mean(y, axis=(0, 2), keepdims=True)
    var = jnp.mean((y - mean) ** 2, axis=(0, 2), keepdims=True)
    y = (y - mean) / jnp.sqrt(var + 1e-5) * params['gamma'][None] + params['beta'][None]
    y = jnp.maximum(y, 0.0)
    z = v + y
    z = z / jnp.maximum(jnp.sqrt(jnp.sum(z * z, axis=1, keepdims=True)), 1e-12)
    return z.reshape(B, Cv, H, W)


if __name__ == "__main__":
    # Small shapes consistent with the module's forward:
    B, Cv, H, W = 2, 4, 16, 16       # v_feat: (B, v_inp_dim, H, W)
    T, Dt, E = 8, 16, 32             # t_feat: (B, T, t_inp_dim), embed_dim = E

    key = jax.random.PRNGKey(0)
    kp, kv, kt = jax.random.split(key, 3)

    params = init_params(kp, Cv, Dt, E)
    v_feat = jax.random.normal(kv, (B, Cv, H, W), jnp.float32)
    t_feat = jax.random.normal(kt, (B, T, Dt), jnp.float32)
    # valid-token mask with per-batch lengths [8, 5]
    lengths = jnp.array([8, 5], jnp.int32)
    t_mask = (jnp.arange(T)[None, :] < lengths[:, None]).astype(jnp.float32)
    t_mask = t_mask[:, :, None]      # (B, T, 1)

    out = jax.block_until_ready(clim_forward(v_feat, t_feat, t_mask, params))
    ref = jax.block_until_ready(clim_reference(v_feat, t_feat, t_mask, params))

    assert out.shape == (B, Cv, H, W)
    err = float(jnp.max(jnp.abs(out - ref)))
    assert jnp.allclose(out, ref, rtol=1e-4, atol=1e-4), err
    print("KERNEL_OK")
</pallas_src>

<mosaic_0001>
module attributes {stable_mosaic.version = 11 : i64} {
  func.func @clim_kernel(%arg0: memref<8x256xf32, #tpu.memory_space<vmem>>, %arg1: memref<17x16xf32, #tpu.memory_space<vmem>>, %arg2: memref<32x17xf32, #tpu.memory_space<vmem>>, %arg3: memref<4x32xf32, #tpu.memory_space<vmem>>, %arg4: memref<32x9xf32, #tpu.memory_space<vmem>>, %arg5: memref<8x256xf32, #tpu.memory_space<vmem>>) attributes {dimension_semantics = [], scalar_prefetch = 0 : i64, scratch_operands = 0 : i64, tpu.core_type = #tpu.core_type<tc>} {
    %c0 = arith.constant 0 : index
    %c0_0 = arith.constant 0 : index
    %0 = vector.load %arg4[%c0, %c0_0] : memref<32x9xf32, #tpu.memory_space<vmem>>, vector<32x9xf32>
    %c0_1 = arith.constant 0 : index
    %c0_2 = arith.constant 0 : index
    %1 = vector.load %arg0[%c0_1, %c0_2] : memref<8x256xf32, #tpu.memory_space<vmem>>, vector<8x256xf32>
    %c0_3 = arith.constant 0 : index
    %c0_4 = arith.constant 0 : index
    %2 = vector.load %arg2[%c0_3, %c0_4] : memref<32x17xf32, #tpu.memory_space<vmem>>, vector<32x17xf32>
    %c0_5 = arith.constant 0 : index
    %c0_6 = arith.constant 0 : index
    %3 = vector.load %arg1[%c0_5, %c0_6] : memref<17x16xf32, #tpu.memory_space<vmem>>, vector<17x16xf32>
    %cst = arith.constant dense<0.000000e+00> : vector<32x16xf32>
    %4 = tpu.matmul %2, %3, %cst {dimension_numbers = #tpu.dot_dimension_numbers<[1], [0], [0], [1], [0, 0, 1, 1], [], []>} : vector<32x17xf32>, vector<17x16xf32>, vector<32x16xf32> -> vector<32x16xf32>
    %5 = math.tanh %4 : vector<32x16xf32>
    %6 = vector.extract_strided_slice %0 {offsets = [0, 4], sizes = [32, 1], strides = [1, 1]} : vector<32x9xf32> to vector<32x1xf32>
    %7 = vector.extract_strided_slice %0 {offsets = [0, 0], sizes = [32, 1], strides = [1, 1]} : vector<32x9xf32> to vector<32x1xf32>
    %8 = vector.extract_strided_slice %1 {offsets = [0, 0], sizes = [1, 256], strides = [1, 1]} : vector<8x256xf32> to vector<1x256xf32>
    %9 = vector.broadcast %7 : vector<32x1xf32> to vector<32x256xf32>
    %10 = vector.broadcast %8 : vector<1x256xf32> to vector<32x256xf32>
    %11 = arith.mulf %9, %10 : vector<32x256xf32>
    %12 = vector.broadcast %6 : vector<32x1xf32> to vector<32x256xf32>
    %13 = arith.addf %11, %12 : vector<32x256xf32>
    %14 = vector.extract_strided_slice %0 {offsets = [0, 1], sizes = [32, 1], strides = [1, 1]} : vector<32x9xf32> to vector<32x1xf32>
    %15 = vector.extract_strided_slice %1 {offsets = [1, 0], sizes = [1, 256], strides = [1, 1]} : vector<8x256xf32> to vector<1x256xf32>
    %16 = vector.broadcast %14 : vector<32x1xf32> to vector<32x256xf32>
    %17 = vector.broadcast %15 : vector<1x256xf32> to vector<32x256xf32>
    %18 = arith.mulf %16, %17 : vector<32x256xf32>
    %19 = arith.addf %13, %18 : vector<32x256xf32>
    %20 = vector.extract_strided_slice %0 {offsets = [0, 2], sizes = [32, 1], strides = [1, 1]} : vector<32x9xf32> to vector<32x1xf32>
    %21 = vector.extract_strided_slice %1 {offsets = [2, 0], sizes = [1, 256], strides = [1, 1]} : vector<8x256xf32> to vector<1x256xf32>
    %22 = vector.broadcast %20 : vector<32x1xf32> to vector<32x256xf32>
    %23 = vector.broadcast %21 : vector<1x256xf32> to vector<32x256xf32>
    %24 = arith.mulf %22, %23 : vector<32x256xf32>
    %25 = arith.addf %19, %24 : vector<32x256xf32>
    %26 = vector.extract_strided_slice %0 {offsets = [0, 3], sizes = [32, 1], strides = [1, 1]} : vector<32x9xf32> to vector<32x1xf32>
    %27 = vector.extract_strided_slice %1 {offsets = [3, 0], sizes = [1, 256], strides = [1, 1]} : vector<8x256xf32> to vector<1x256xf32>
    %28 = vector.broadcast %26 : vector<32x1xf32> to vector<32x256xf32>
    %29 = vector.broadcast %27 : vector<1x256xf32> to vector<32x256xf32>
    %30 = arith.mulf %28, %29 : vector<32x256xf32>
    %31 = arith.addf %25, %30 : vector<32x256xf32>
    %32 = math.tanh %31 : vector<32x256xf32>
    %33 = vector.extract_strided_slice %5 {offsets = [0, 0], sizes = [32, 8], strides = [1, 1]} : vector<32x16xf32> to vector<32x8xf32>
    %cst_7 = arith.constant dense<0.000000e+00> : vector<32xf32>
    %34 = vector.multi_reduction <add>, %33, %cst_7 [1] : vector<32x8xf32> to vector<32xf32>
    %35 = vector.shape_cast %34 : vector<32xf32> to vector<32x1xf32>
    %36 = vector.extract_strided_slice %0 {offsets = [0, 7], sizes = [32, 1], strides = [1, 1]} : vector<32x9xf32> to vector<32x1xf32>
    %37 = arith.mulf %35, %36 : vector<32x1xf32>
    %38 = vector.broadcast %37 : vector<32x1xf32> to vector<32x256xf32>
    %39 = arith.mulf %32, %38 : vector<32x256xf32>
    %cst_8 = arith.constant 0.000000e+00 : f32
    %40 = vector.broadcast %cst_8 : f32 to vector<32x256xf32>
    %41 = arith.maximumf %39, %40 : vector<32x256xf32>
    %42 = vector.extract_strided_slice %0 {offsets = [0, 0], sizes = [32, 1], strides = [1, 1]} : vector<32x9xf32> to vector<32x1xf32>
    %43 = vector.extract_strided_slice %1 {offsets = [4, 0], sizes = [1, 256], strides = [1, 1]} : vector<8x256xf32> to vector<1x256xf32>
    %44 = vector.broadcast %42 : vector<32x1xf32> to vector<32x256xf32>
    %45 = vector.broadcast %43 : vector<1x256xf32> to vector<32x256xf32>
    %46 = arith.mulf %44, %45 : vector<32x256xf32>
    %47 = vector.broadcast %6 : vector<32x1xf32> to vector<32x256xf32>
    %48 = arith.addf %46, %47 : vector<32x256xf32>
    %49 = vector.extract_strided_slice %0 {offsets = [0, 1], sizes = [32, 1], strides = [1, 1]} : vector<32x9xf32> to vector<32x1xf32>
    %50 = vector.extract_strided_slice %1 {offsets = [5, 0], sizes = [1, 256], strides = [1, 1]} : vector<8x256xf32> to vector<1x256xf32>
    %51 = vector.broadcast %49 : vector<32x1xf32> to vector<32x256xf32>
    %52 = vector.broadcast %50 : vector<1x256xf32> to vector<32x256xf32>
    %53 = arith.mulf %51, %52 : vector<32x256xf32>
    %54 = arith.addf %48, %53 : vector<32x256xf32>
    %55 = vector.extract_strided_slice %0 {offsets = [0, 2], sizes = [32, 1], strides = [1, 1]} : vector<32x9xf32> to vector<32x1xf32>
    %56 = vector.extract_strided_slice %1 {offsets = [6, 0], sizes = [1, 256], strides = [1, 1]} : vector<8x256xf32> to vector<1x256xf32>
    %57 = vector.broadcast %55 : vector<32x1xf32> to vector<32x256xf32>
    %58 = vector.broadcast %56 : vector<1x256xf32> to vector<32x256xf32>
    %59 = arith.mulf %57, %58 : vector<32x256xf32>
    %60 = arith.addf %54, %59 : vector<32x256xf32>
    %61 = vector.extract_strided_slice %0 {offsets = [0, 3], sizes = [32, 1], strides = [1, 1]} : vector<32x9xf32> to vector<32x1xf32>
    %62 = vector.extract_strided_slice %1 {offsets = [7, 0], sizes = [1, 256], strides = [1, 1]} : vector<8x256xf32> to vector<1x256xf32>
    %63 = vector.broadcast %61 : vector<32x1xf32> to vector<32x256xf32>
    %64 = vector.broadcast %62 : vector<1x256xf32> to vector<32x256xf32>
    %65 = arith.mulf %63, %64 : vector<32x256xf32>
    %66 = arith.addf %60, %65 : vector<32x256xf32>
    %67 = math.tanh %66 : vector<32x256xf32>
    %68 = vector.extract_strided_slice %5 {offsets = [0, 8], sizes = [32, 8], strides = [1, 1]} : vector<32x16xf32> to vector<32x8xf32>
    %cst_9 = arith.constant dense<0.000000e+00> : vector<32xf32>
    %69 = vector.multi_reduction <add>, %68, %cst_9 [1] : vector<32x8xf32> to vector<32xf32>
    %70 = vector.shape_cast %69 : vector<32xf32> to vector<32x1xf32>
    %71 = vector.extract_strided_slice %0 {offsets = [0, 8], sizes = [32, 1], strides = [1, 1]} : vector<32x9xf32> to vector<32x1xf32>
    %72 = arith.mulf %70, %71 : vector<32x1xf32>
    %73 = vector.broadcast %72 : vector<32x1xf32> to vector<32x256xf32>
    %74 = arith.mulf %67, %73 : vector<32x256xf32>
    %cst_10 = arith.constant 0.000000e+00 : f32
    %75 = vector.broadcast %cst_10 : f32 to vector<32x256xf32>
    %76 = arith.maximumf %74, %75 : vector<32x256xf32>
    %77 = tpu.concatenate %41, %76 in 1 : vector<32x256xf32>, vector<32x256xf32> -> vector<32x512xf32>
    %c0_11 = arith.constant 0 : index
    %c0_12 = arith.constant 0 : index
    %78 = vector.load %arg3[%c0_11, %c0_12] : memref<4x32xf32, #tpu.memory_space<vmem>>, vector<4x32xf32>
    %cst_13 = arith.constant dense<0.000000e+00> : vector<4x512xf32>
    %79 = tpu.matmul %78, %77, %cst_13 {dimension_numbers = #tpu.dot_dimension_numbers<[1], [0], [0], [1], [0, 0, 1, 1], [], []>} : vector<4x32xf32>, vector<32x512xf32>, vector<4x512xf32> -> vector<4x512xf32>
    %cst_14 = arith.constant dense<0.000000e+00> : vector<4xf32>
    %80 = vector.multi_reduction <add>, %79, %cst_14 [1] : vector<4x512xf32> to vector<4xf32>
    %81 = vector.shape_cast %80 : vector<4xf32> to vector<4x1xf32>
    %82 = arith.mulf %79, %79 : vector<4x512xf32>
    %cst_15 = arith.constant dense<0.000000e+00> : vector<4xf32>
    %83 = vector.multi_reduction <add>, %82, %cst_15 [1] : vector<4x512xf32> to vector<4xf32>
    %84 = vector.shape_cast %83 : vector<4xf32> to vector<4x1xf32>
    %cst_16 = arith.constant 0.001953125 : f32
    %85 = vector.broadcast %cst_16 : f32 to vector<4x1xf32>
    %86 = arith.mulf %81, %85 : vector<4x1xf32>
    %cst_17 = arith.constant 0.001953125 : f32
    %87 = vector.broadcast %cst_17 : f32 to vector<4x1xf32>
    %88 = arith.mulf %84, %87 : vector<4x1xf32>
    %89 = arith.mulf %86, %86 : vector<4x1xf32>
    %90 = arith.subf %88, %89 : vector<4x1xf32>
    %cst_18 = arith.constant 0.000000e+00 : f32
    %91 = vector.broadcast %cst_18 : f32 to vector<4x1xf32>
    %92 = arith.maximumf %90, %91 : vector<4x1xf32>
    %93 = vector.extract_strided_slice %0 {offsets = [0, 5], sizes = [4, 1], strides = [1, 1]} : vector<32x9xf32> to vector<4x1xf32>
    %cst_19 = arith.constant 9.99999974E-6 : f32
    %94 = vector.broadcast %cst_19 : f32 to vector<4x1xf32>
    %95 = arith.addf %92, %94 : vector<4x1xf32>
    %96 = math.rsqrt %95 : vector<4x1xf32>
    %97 = arith.mulf %93, %96 : vector<4x1xf32>
    %98 = vector.extract_strided_slice %0 {offsets = [0, 6], sizes = [4, 1], strides = [1, 1]} : vector<32x9xf32> to vector<4x1xf32>
    %99 = arith.mulf %86, %97 : vector<4x1xf32>
    %100 = arith.subf %98, %99 : vector<4x1xf32>
    %101 = vector.extract_strided_slice %79 {offsets = [0, 0], sizes = [4, 256], strides = [1, 1]} : vector<4x512xf32> to vector<4x256xf32>
    %102 = vector.broadcast %97 : vector<4x1xf32> to vector<4x256xf32>
    %103 = arith.mulf %101, %102 : vector<4x256xf32>
    %104 = vector.broadcast %100 : vector<4x1xf32> to vector<4x256xf32>
    %105 = arith.addf %103, %104 : vector<4x256xf32>
    %cst_20 = arith.constant 0.000000e+00 : f32
    %106 = vector.broadcast %cst_20 : f32 to vector<4x256xf32>
    %107 = arith.maximumf %105, %106 : vector<4x256xf32>
    %108 = vector.extract_strided_slice %1 {offsets = [0, 0], sizes = [4, 256], strides = [1, 1]} : vector<8x256xf32> to vector<4x256xf32>
    %109 = arith.addf %108, %107 : vector<4x256xf32>
    %110 = arith.mulf %109, %109 : vector<4x256xf32>
    %cst_21 = arith.constant dense<0.000000e+00> : vector<256xf32>
    %111 = vector.multi_reduction <add>, %110, %cst_21 [0] : vector<4x256xf32> to vector<256xf32>
    %112 = vector.shape_cast %111 : vector<256xf32> to vector<1x256xf32>
    %cst_22 = arith.constant 1.000000e-24 : f32
    %113 = vector.broadcast %cst_22 : f32 to vector<1x256xf32>
    %114 = arith.maximumf %112, %113 : vector<1x256xf32>
    %115 = math.rsqrt %114 : vector<1x256xf32>
    %116 = vector.broadcast %115 : vector<1x256xf32> to vector<4x256xf32>
    %117 = arith.mulf %109, %116 : vector<4x256xf32>
    %c0_23 = arith.constant 0 : index
    %c0_24 = arith.constant 0 : index
    %118 = vector.load %arg5[%c0_23, %c0_24] : memref<8x256xf32, #tpu.memory_space<vmem>>, vector<4x256xf32>
    tpu.vector_store %arg5[%c0_23, %c0_24], %117 {strides = array<i32>} : memref<8x256xf32, #tpu.memory_space<vmem>>, vector<4x256xf32>,
    %119 = vector.extract_strided_slice %79 {offsets = [0, 256], sizes = [4, 256], strides = [1, 1]} : vector<4x512xf32> to vector<4x256xf32>
    %120 = vector.broadcast %97 : vector<4x1xf32> to vector<4x256xf32>
    %121 = arith.mulf %119, %120 : vector<4x256xf32>
    %122 = vector.broadcast %100 : vector<4x1xf32> to vector<4x256xf32>
    %123 = arith.addf %121, %122 : vector<4x256xf32>
    %cst_25 = arith.constant 0.000000e+00 : f32
    %124 = vector.broadcast %cst_25 : f32 to vector<4x256xf32>
    %125 = arith.maximumf %123, %124 : vector<4x256xf32>
    %126 = vector.extract_strided_slice %1 {offsets = [4, 0], sizes = [4, 256], strides = [1, 1]} : vector<8x256xf32> to vector<4x256xf32>
    %127 = arith.addf %126, %125 : vector<4x256xf32>
    %128 = arith.mulf %127, %127 : vector<4x256xf32>
    %cst_26 = arith.constant dense<0.000000e+00> : vector<256xf32>
    %129 = vector.multi_reduction <add>, %128, %cst_26 [0] : vector<4x256xf32> to vector<256xf32>
    %130 = vector.shape_cast %129 : vector<256xf32> to vector<1x256xf32>
    %cst_27 = arith.constant 1.000000e-24 : f32
    %131 = vector.broadcast %cst_27 : f32 to vector<1x256xf32>
    %132 = arith.maximumf %130, %131 : vector<1x256xf32>
    %133 = math.rsqrt %132 : vector<1x256xf32>
    %134 = vector.broadcast %133 : vector<1x256xf32> to vector<4x256xf32>
    %135 = arith.mulf %127, %134 : vector<4x256xf32>
    %c4 = arith.constant 4 : index
    %c0_28 = arith.constant 0 : index
    %136 = vector.load %arg5[%c4, %c0_28] : memref<8x256xf32, #tpu.memory_space<vmem>>, vector<4x256xf32>
    tpu.vector_store %arg5[%c4, %c0_28], %135 {strides = array<i32>} : memref<8x256xf32, #tpu.memory_space<vmem>>, vector<4x256xf32>,
    return
  }
}

</mosaic_0001>

<bundles_post_ra>
// kernel: tpu_custom_call.1
= control target key start
LH: loop header
LB: loop body
LE: loop exit
PB: predicated region body
PF: predicated region fallthrough
CT: control target
= control target key end

     0   :  { %vm47_vm0 = vcmask 1040384   ;;  %vm34_vm1 = vcmask 138240   ;;  %s1371_s0 = inlined_call_operand.vmem [shape: f32[8,256], index: 0, kind: input, shape index: {}]   ;;  %s1372_s1 = inlined_call_operand.vmem [shape: f32[17,16], index: 1, kind: input, shape index: {}]   ;;  %s1373_s2 = inlined_call_operand.vmem [shape: f32[32,17], index: 2, kind: input, shape index: {}]   ;;  %s1374_s3 = inlined_call_operand.vmem [shape: f32[4,32], index: 3, kind: input, shape index: {}]   ;;  %s1375_s4 = inlined_call_operand.vmem [shape: f32[32,9], index: 4, kind: input, shape index: {}]   ;;  %s1376_s5 = inlined_call_operand.hbm [shape: f32[8,256], index: 5, kind: output, shape index: {}]  }
   0x1   :  { %v33_v0 = vld [vmem:[%s1372_s1 + $0x10] sm:$0x1]  ;;  %v32_v1 = vld [vmem:[%s1372_s1 + $0x8] sm:$0xff]  ;;  %v27_v2 = vld [vmem:[%s1373_s2] sm:$0xff] }
   0x2   :  { %851 = vmatprep.subr.msk.mxu0 %vm47_vm0, %v33_v0  ;;  %v31_v3 = vld [vmem:[%s1372_s1] sm:$0xff]  ;;  %857 = vmatprep.mubr.msk.f32.mxu0 %vm34_vm1, %v27_v2 }
   0x3   :  { %852 = vmatpush3.msk.msra.mxu0 %vm47_vm0, %v33_v0 }
   0x4   :  { %10 = vsyncpa [#allocation3], 0  ;;  %853 = vmatprep.subr.mxu0 %v32_v1  ;;  %v28_v4 = vld [vmem:[%s1373_s2 + $0x8] sm:$0xff]  ;;  %v29_v5 = vld [vmem:[%s1373_s2 + $0x10] sm:$0xff]  ;;  %v973_v7 = vmov 0   ;;  %s974_s6 = smov 120   ;;  %v160_v47 = vlaneseq }
   0x5   :  { %854 = vmatpush3.msra.mxu0 %v32_v1  ;;  %v30_v6 = vld [vmem:[%s1373_s2 + $0x18] sm:$0xff]  ;;  %876 = vset.pattern.permute.xlu1 %v973_v7  ;;  %vm328_vm2 = vcmask 64512   ;;  %v975_v20 = vmov 4   ;;  %v976_v30 = vmov 1   ;;  %v1062_v31 = vld [vmem:[%s1375_s4 + $0x8] sm:$0xff]  ;;  %v1069_v32 = vld [vmem:[%s1375_s4 + $0x10] sm:$0xff] }
   0x6   :  { %855 = vmatprep.subr.mxu0 %v31_v3  ;;  %877 = vset.pattern.permute.xlu0 %v973_v7  ;;  %v1049_v19 = vld [vmem:[%s1375_s4 + $0x18] sm:$0xff]  ;;  %v977_v33 = vmov 2   ;;  %v1079_v34 = vld [vmem:[%s1375_s4] sm:$0xff]  ;;  %v978_v35 = vmov 3   ;;  %v979_v36 = vmov 7   ;;  %v980_v43 = vmov 8  }
   0x7   :  { %856 = vmatpush3.msra.mxu0 %v31_v3  ;;  %v1099_v48 = vshrl.u32 %v160_v47, 7  ;;  %v1105_v50 = vld [vmem:[%s1371_s0] sm:$0xff]  ;;  %v1110_v51 = vld [vmem:[%s1371_s0 + $0x8] sm:$0xff]  ;;  %vm554_vm3 = vcmask 261120   ;;  %vm700_vm4 = vcmask 1043456   ;;  %s985_s18 = smov [#allocation2]  }
   0x8   :  { %858 = vmatmul.mubr.msk.f32.vlgmr.msra.gmra.mxu0 %vm34_vm1, %v28_v4  ;;  %s829_s19 = sshll.u32 %s985_s18, 4  ;;  %s830_s19 = int_to_ptr.vmem [resolvable:$true] %s829_s19 }
   0x9   :  { %860 = vmatprep.mubr.msk.f32.mxu0 %vm34_vm1, %v29_v5  ;;  %v383_v49 = vsub.s32 4, %v1099_v48  ;;  %v407_v56 = vsub.s32 5, %v1099_v48  ;;  %v258_v47 = vsub.s32 2, %v1099_v48  ;;  %s951_s20 = scalar_lea.vmem %s830_s19, 256  ;;  %p956_p1 = scmp.lt.s32.totalorder %s830_s19, %s830_s19 }
   0xa   :  { %p952_p0 = scmp.ne.s32.totalorder %s830_s19, %s951_s20  ;;  %p957_p2 = scmp.lt.s32.totalorder %s951_s20, %s951_s20 }
   0xb   :  { %v1113_v52 = vrot.slane %v1105_v50, %v383_v49  ;;  %v1116_v53 = vrot.slane %v1110_v51, %v383_v49  ;;  %v1128_v62 = vrot.slane %v1105_v50, %v407_v56  ;;  %v1132_v0 = vrot.slane %v1110_v51, %v407_v56 }
   0xc   :  { %861 = vmatmul.mubr.msk.f32.gmra.mxu0 %vm34_vm1, %v30_v6  ;;  %p958_p3 = por %p957_p2, %p956_p1 }
   0xe   :  { %p959_p4 = pnand %p958_p3, %p952_p0 }
  0xc8   :  { %v859_v8 = vpop.f32.mrf.mxu0 }
  0xc9   :  { %901 = vtanh.f32 %v859_v8 }
  0xca   :  { %v117_v9 = vpop.f32.mrf.mxu0 }
  0xcb   :  { %903 = vtanh.f32 %v117_v9 }
  0xcc   :  { %v862_v10 = vpop.f32.mrf.mxu0 }
  0xcd   :  { %905 = vtanh.f32 %v862_v10 }
  0xce   :  { %v127_v11 = vpop.f32.mrf.mxu0 }
  0xcf   :  { %907 = vtanh.f32 %v127_v11 }
  0xd6   :  { %v902_v12 = vpop.eup %901 }
  0xd7   :  { %491 = vrot.lane.b32.xlu1 %v902_v12, %s974_s6  ;;  %v332_v18 = vsel %vm328_vm2, %v902_v12, 0.0 }
  0xd8   :  { %v904_v13 = vpop.eup %903 }
  0xd9   :  { %v329_v17 = vsel %vm328_vm2, %v904_v13, 0.0 }
  0xda   :  { %v906_v14 = vpop.eup %905 }
  0xdb   :  { %489 = vrot.lane.b32.xlu1 %v904_v13, %s974_s6  ;;  %495 = vrot.lane.b32.xlu0 %v906_v14, %s974_s6  ;;  %v338_v16 = vsel %vm328_vm2, %v906_v14, 0.0  ;;  %v981_v13 = vmov 0.0  }
  0xdc   :  { %v908_v15 = vpop.eup %907  ;;  %622 = vmatprep.mubr.f32.mxu1 %v981_v13  ;;  %693 = vmatprep.mubr.f32.mxu0 %v981_v13 }
  0xdd   :  { %v335_v21 = vsel %vm328_vm2, %v908_v15, 0.0 }
  0xdf   :  { %493 = vrot.lane.b32.xlu0 %v908_v15, %s974_s6  ;;  %v431_v15 = vsub.s32 6, %v1099_v48 }
  0xfe   :  { %339 = vadd.xlane.f32.xlu0 %v338_v16 }
  0xff   :  { %330 = vadd.xlane.f32.xlu1 %v329_v17 }
 0x102   :  { %333 = vadd.xlane.f32.xlu0 %v332_v18 }
 0x110   :  { %157 = vperm.xlu1 %876, %v1049_v19  }
 0x114   :  { %878 = vset.pattern.permute.xlu1 %v975_v20 }
 0x134   :  { %336 = vadd.xlane.f32.xlu1 %v335_v21 }
 0x149   :  { %v492_v22 = vpop.permute.xlu1 %491 }
 0x14a   :  { %v504_v23 = vsel %vm328_vm2, %v492_v22, 0.0 }
 0x14b   :  { %505 = vadd.xlane.f32.xlu1 %v504_v23  ;;  %v1163_v23 = vrot.slane %v1105_v50, %v431_v15 }
 0x14d   :  { %v490_v24 = vpop.permute.xlu1 %489  ;;  %v496_v25 = vpop.permute.xlu0 %495 }
 0x14e   :  { %v501_v26 = vsel %vm328_vm2, %v490_v24, 0.0  ;;  %v510_v27 = vsel %vm328_vm2, %v496_v25, 0.0  ;;  %v1166_v24 = vrot.slane %v1110_v51, %v431_v15 }
 0x14f   :  { %502 = vadd.xlane.f32.xlu0 %v501_v26 }
 0x151   :  { %v494_v28 = vpop.permute.xlu0 %493 }
 0x152   :  { %v507_v29 = vsel %vm328_vm2, %v494_v28, 0.0 }
 0x153   :  { %511 = vadd.xlane.f32.xlu0 %v510_v27 }
 0x157   :  { %508 = vadd.xlane.f32.xlu0 %v507_v29 }
 0x15c   :  { %189 = vperm.xlu1 %878, %v1049_v19  }
 0x160   :  { %879 = vset.pattern.permute.xlu1 %v976_v30 }
 0x161   :  { %213 = vperm.xlu1 %879, %v1049_v19  }
 0x165   :  { %880 = vset.pattern.permute.xlu1 %v973_v7 }
 0x166   :  { %147 = vperm.xlu1 %880, %v1062_v31  }
 0x16a   :  { %881 = vset.pattern.permute.xlu1 %v975_v20 }
 0x16b   :  { %185 = vperm.xlu1 %881, %v1069_v32  }
 0x16d   :  { %152 = vperm.xlu0 %877, %v1069_v32  }
 0x16f   :  { %882 = vset.pattern.permute.xlu1 %v976_v30 }
 0x170   :  { %209 = vperm.xlu1 %882, %v1069_v32  }
 0x171   :  { %886 = vset.pattern.permute.xlu0 %v976_v30 }
 0x172   :  { %205 = vperm.xlu0 %886, %v1062_v31  }
 0x174   :  { %883 = vset.pattern.permute.xlu1 %v977_v33 }
 0x175   :  { %253 = vperm.xlu1 %883, %v1049_v19  }
 0x176   :  { %889 = vset.pattern.permute.xlu0 %v975_v20 }
 0x177   :  { %177 = vperm.xlu0 %889, %v1079_v34  }
 0x179   :  { %884 = vset.pattern.permute.xlu1 %v973_v7 }
 0x17a   :  { %142 = vperm.xlu1 %884, %v1079_v34  }
 0x17b   :  { %892 = vset.pattern.permute.xlu0 %v978_v35 }
 0x17c   :  { %289 = vperm.xlu0 %892, %v1069_v32  }
 0x17e   :  { %885 = vset.pattern.permute.xlu1 %v975_v20 }
 0x17f   :  { %181 = vperm.xlu1 %885, %v1062_v31  }
 0x180   :  { %281 = vperm.xlu0 %892, %v1079_v34  }
 0x183   :  { %887 = vset.pattern.permute.xlu1 %v977_v33 }
 0x184   :  { %249 = vperm.xlu1 %887, %v1069_v32   ;;  %895 = vset.pattern.permute.xlu0 %v979_v36 }
 0x187   :  { %v340_v39 = vpop.xlane.xlu0 %339 }
 0x188   :  { %v331_v37 = vpop.xlane.xlu1 %330  ;;  %888 = vset.pattern.permute.xlu1 %v978_v35  ;;  %v344_v42 = vmul.f32 %v340_v39, %v1049_v19  ;;  %v455_v39 = vsub.s32 7, %v1099_v48 }
 0x189   :  { %v341_v38 = vmul.f32 %v331_v37, %v1079_v34  ;;  %293 = vperm.xlu1 %888, %v1049_v19  }
 0x18b   :  { %347 = vperm.xlu0 %895, %v341_v38   ;;  %v334_v40 = vpop.xlane.xlu0 %333 }
 0x18c   :  { %v342_v41 = vmul.f32 %v334_v40, %v1062_v31  ;;  %v1096_v44 = vpop.permute.xlu1 %157 }
 0x18d   :  { %890 = vset.pattern.permute.xlu1 %v976_v30  ;;  %v395_v57 = vmul.f32 %v1113_v52, %v1096_v44  ;;  %v396_v58 = vmul.f32 %v1116_v53, %v1096_v44 }
 0x18e   :  { %201 = vperm.xlu1 %890, %v1079_v34  }
 0x192   :  { %891 = vset.pattern.permute.xlu1 %v977_v33 }
 0x193   :  { %245 = vperm.xlu1 %891, %v1062_v31  }
 0x197   :  { %241 = vperm.xlu1 %891, %v1079_v34  }
 0x19b   :  { %893 = vset.pattern.permute.xlu1 %v978_v35 }
 0x19c   :  { %285 = vperm.xlu1 %893, %v1062_v31  }
 0x1a0   :  { %894 = vset.pattern.permute.xlu1 %v979_v36 }
 0x1a1   :  { %352 = vperm.xlu1 %894, %v342_v41  }
 0x1a5   :  { %362 = vperm.xlu1 %894, %v344_v42   ;;  %v162_v42 = vsub.s32 0, %v1099_v48 }
 0x1a9   :  { %897 = vset.pattern.permute.xlu1 %v980_v43 }
 0x1bd   :  { %v337_v45 = vpop.xlane.xlu1 %336 }
 0x1be   :  { %v343_v46 = vmul.f32 %v337_v45, %v1069_v32  ;;  %v1188_v45 = vrot.slane %v1105_v50, %v455_v39 }
 0x1c0   :  { %357 = vperm.xlu0 %895, %v343_v46   ;;  %v1191_v46 = vrot.slane %v1110_v51, %v455_v39 }
 0x1c4   :  { %896 = vset.pattern.permute.xlu0 %v980_v43  ;;  %v218_v43 = vsub.s32 1, %v1099_v48 }
 0x1d4   :  { %v506_v54 = vpop.xlane.xlu1 %505 }
 0x1d5   :  { %v514_v55 = vmul.f32 %v506_v54, %v1062_v31 }
 0x1d7   :  { %524 = vperm.xlu0 %896, %v514_v55  }
 0x1d8   :  { %v503_v59 = vpop.xlane.xlu0 %502  ;;  %v1124_v60 = vpop.permute.xlu1 %189 }
 0x1d9   :  { %v403_v61 = vadd.f32 %v395_v57, %v1124_v60  ;;  %v404_v63 = vadd.f32 %v396_v58, %v1124_v60  ;;  %v513_v11 = vmul.f32 %v503_v59, %v1079_v34  ;;  %v1207_v59 = vrot.slane %v1105_v50, %v162_v42 }
 0x1dc   :  { %v512_v1 = vpop.xlane.xlu0 %511  ;;  %v1134_v2 = vpop.permute.xlu1 %213 }
 0x1dd   :  { %v516_v3 = vmul.f32 %v512_v1, %v1049_v19  ;;  %v419_v4 = vmul.f32 %v1128_v62, %v1134_v2  ;;  %v420_v5 = vmul.f32 %v1132_v0, %v1134_v2 }
 0x1df   :  { %v427_v6 = vadd.f32 %v419_v4, %v403_v61  ;;  %534 = vperm.xlu1 %897, %v516_v3   ;;  %v428_v7 = vadd.f32 %v420_v5, %v404_v63  ;;  %v1210_v61 = vrot.slane %v1105_v50, %v218_v43  ;;  %v298_v63 = vsub.s32 3, %v1099_v48 }
 0x1e0   :  { %v509_v8 = vpop.xlane.xlu0 %508  ;;  %v1214_v4 = vrot.slane %v1110_v51, %v162_v42  ;;  %v1217_v5 = vrot.slane %v1110_v51, %v218_v43  ;;  %v1229_v48 = vrot.slane %v1110_v51, %v258_v47 }
 0x1e1   :  { %v515_v9 = vmul.f32 %v509_v8, %v1069_v32  ;;  %v1142_v10 = vpop.permute.xlu1 %147 }
 0x1e2   :  { %v391_v35 = vmul.f32 %v1113_v52, %v1142_v10  ;;  %v392_v36 = vmul.f32 %v1116_v53, %v1142_v10 }
 0x1e3   :  { %529 = vperm.xlu1 %897, %v515_v9  }
 0x1e6   :  { %v1145_v12 = vpop.permute.xlu1 %185 }
 0x1e7   :  { %519 = vperm.xlu1 %897, %v513_v11  }
 0x1e8   :  { %v1147_v14 = vpop.permute.xlu0 %152 }
 0x1e9   :  { %v393_v16 = vmul.f32 %v1113_v52, %v1147_v14  ;;  %v394_v17 = vmul.f32 %v1116_v53, %v1147_v14 }
 0x1eb   :  { %v1154_v18 = vpop.permute.xlu1 %209  ;;  %v401_v19 = vadd.f32 %v393_v16, %v1145_v12  ;;  %v402_v20 = vadd.f32 %v394_v17, %v1145_v12  ;;  %v174_v17 = vmul.f32 %v1207_v59, %v1096_v44 }
 0x1ec   :  { %v417_v21 = vmul.f32 %v1128_v62, %v1154_v18  ;;  %v418_v22 = vmul.f32 %v1132_v0, %v1154_v18 }
 0x1ed   :  { %v1170_v32 = vpop.permute.xlu0 %205 }
 0x1ee   :  { %v425_v25 = vadd.f32 %v417_v21, %v401_v19  ;;  %v426_v26 = vadd.f32 %v418_v22, %v402_v20  ;;  %v1240_v19 = vrot.slane %v1105_v50, %v298_v63  ;;  %v175_v20 = vmul.f32 %v1214_v4, %v1096_v44 }
 0x1ef   :  { %v231_v21 = vmul.f32 %v1217_v5, %v1134_v2 }
 0x1f0   :  { %v254_v27 = vpop.permute.xlu1 %253 }
 0x1f1   :  { %v443_v28 = vmul.f32 %v1163_v23, %v254_v27  ;;  %v444_v29 = vmul.f32 %v1166_v24, %v254_v27  ;;  %v271_v44 = vmul.f32 %v1229_v48, %v254_v27 }
 0x1f2   :  { %v1178_v37 = vpop.permute.xlu0 %177 }
 0x1f3   :  { %v451_v30 = vadd.f32 %v443_v28, %v427_v6  ;;  %v452_v31 = vadd.f32 %v444_v29, %v428_v7  ;;  %v1220_v6 = vrot.slane %v1105_v50, %v258_v47 }
 0x1f5   :  { %v1172_v33 = vpop.permute.xlu1 %142 }
 0x1f6   :  { %v389_v7 = vmul.f32 %v1113_v52, %v1172_v33  ;;  %v390_v13 = vmul.f32 %v1116_v53, %v1172_v33  ;;  %v230_v52 = vmul.f32 %v1210_v61, %v1134_v2  ;;  %v1247_v53 = vrot.slane %v1110_v51, %v298_v63 }
 0x1f7   :  { %v1194_v49 = vpop.permute.xlu0 %289 }
 0x1f8   :  { %v465_v55 = vmul.f32 %v1188_v45, %v1194_v49  ;;  %v466_v56 = vmul.f32 %v1191_v46, %v1194_v49  ;;  %v397_v28 = vadd.f32 %v389_v7, %v1178_v37 }
 0x1fa   :  { %v1180_v38 = vpop.permute.xlu1 %181 }
 0x1fb   :  { %v399_v40 = vadd.f32 %v391_v35, %v1180_v38  ;;  %v400_v41 = vadd.f32 %v392_v36, %v1180_v38  ;;  %v199_v35 = vadd.f32 %v1124_v60, %v175_v20  ;;  %v398_v36 = vadd.f32 %v390_v13, %v1178_v37  ;;  %v1267_v7 = vpop.permute.xlu0 %281 }
 0x1fc   :  { %v462_v13 = vmul.f32 %v1191_v46, %v1267_v7 }
 0x1fd   :  { %v239_v43 = vadd.f32 %v231_v21, %v199_v35  ;;  %v172_v21 = vmul.f32 %v1207_v59, %v1147_v14 }
 0x1ff   :  { %v1196_v54 = vpop.permute.xlu1 %249 }
 0x200   :  { %v441_v57 = vmul.f32 %v1163_v23, %v1196_v54  ;;  %v442_v58 = vmul.f32 %v1166_v24, %v1196_v54 }
 0x202   :  { %v449_v1 = vadd.f32 %v441_v57, %v425_v25  ;;  %v450_v3 = vadd.f32 %v442_v58, %v426_v26  ;;  %v198_v25 = vadd.f32 %v1124_v60, %v174_v17  ;;  %v270_v26 = vmul.f32 %v1220_v6, %v254_v27 }
 0x203   :  { %v279_v57 = vadd.f32 %v271_v44, %v239_v43  ;;  %v415_v60 = vmul.f32 %v1128_v62, %v1170_v32  ;;  %v416_v27 = vmul.f32 %v1132_v0, %v1170_v32  ;;  %v196_v43 = vadd.f32 %v1145_v12, %v172_v21 }
 0x204   :  { %v1224_v8 = vadd.f32 %v465_v55, %v449_v1  ;;  %v1226_v9 = vadd.f32 %v466_v56, %v450_v3  ;;  %v294_v11 = vpop.permute.xlu1 %293  ;;  %v238_v39 = vadd.f32 %v230_v52, %v198_v25  ;;  %v173_v25 = vmul.f32 %v1214_v4, %v1147_v14 }
 0x205   :  { %v467_v15 = vmul.f32 %v1188_v45, %v294_v11  ;;  %v468_v16 = vmul.f32 %v1191_v46, %v294_v11  ;;  %v310_v42 = vmul.f32 %v1240_v19, %v294_v11  ;;  %v311_v47 = vmul.f32 %v1247_v53, %v294_v11 }
 0x206   :  { %v278_v56 = vadd.f32 %v270_v26, %v238_v39  ;;  %v461_v11 = vmul.f32 %v1188_v45, %v1267_v7  ;;  %v228_v14 = vmul.f32 %v1210_v61, %v1154_v18 }
 0x207   :  { %v1249_v22 = vadd.f32 %v467_v15, %v451_v30  ;;  %v1254_v29 = vadd.f32 %v468_v16, %v452_v31  ;;  %v319_v3 = vadd.f32 %v311_v47, %v279_v57  ;;  %v423_v15 = vadd.f32 %v415_v60, %v399_v40 }
 0x208   :  { %v318_v63 = vadd.f32 %v310_v42, %v278_v56  ;;  %v424_v16 = vadd.f32 %v416_v27, %v400_v41  ;;  %v197_v47 = vadd.f32 %v1145_v12, %v173_v25  ;;  %v226_v12 = vmul.f32 %v1210_v61, %v1170_v32 }
 0x209   :  { %v202_v2 = vpop.permute.xlu1 %201 }
 0x20a   :  { %v413_v30 = vmul.f32 %v1128_v62, %v202_v2  ;;  %v414_v55 = vmul.f32 %v1132_v0, %v202_v2  ;;  %909 = vtanh.f32 %v318_v63  ;;  %v225_v27 = vmul.f32 %v1217_v5, %v202_v2 }
 0x20b   :  { %911 = vtanh.f32 %v319_v3 }
 0x20c   :  { %v421_v31 = vadd.f32 %v413_v30, %v397_v28  ;;  %v422_v58 = vadd.f32 %v414_v55, %v398_v36  ;;  %v229_v30 = vmul.f32 %v1217_v5, %v1154_v18  ;;  %v169_v55 = vmul.f32 %v1214_v4, %v1172_v33 }
 0x20e   :  { %v246_v1 = vpop.permute.xlu1 %245  ;;  %v193_v60 = vadd.f32 %v1178_v37, %v169_v55 }
 0x20f   :  { %v439_v17 = vmul.f32 %v1163_v23, %v246_v1  ;;  %v440_v0 = vmul.f32 %v1166_v24, %v246_v1 }
 0x210   :  { %v233_v21 = vadd.f32 %v225_v27, %v193_v60 }
 0x211   :  { %v447_v41 = vadd.f32 %v439_v17, %v423_v15  ;;  %v448_v28 = vadd.f32 %v440_v0, %v424_v16  ;;  %v309_v15 = vmul.f32 %v1247_v53, %v1194_v49  ;;  %v267_v16 = vmul.f32 %v1229_v48, %v246_v1 }
 0x212   :  { %v242_v62 = vpop.permute.xlu1 %241 }
 0x213   :  { %v437_v52 = vmul.f32 %v1163_v23, %v242_v62  ;;  %v438_v20 = vmul.f32 %v1166_v24, %v242_v62  ;;  %v170_v23 = vmul.f32 %v1207_v59, %v1142_v10  ;;  %v171_v24 = vmul.f32 %v1214_v4, %v1142_v10 }
 0x214   :  { %v168_v10 = vmul.f32 %v1207_v59, %v1172_v33  ;;  %v236_v4 = vadd.f32 %v228_v14, %v196_v43  ;;  %v268_v33 = vmul.f32 %v1220_v6, %v1196_v54  ;;  %v269_v59 = vmul.f32 %v1229_v48, %v1196_v54 }
 0x215   :  { %v445_v26 = vadd.f32 %v437_v52, %v421_v31  ;;  %v446_v40 = vadd.f32 %v438_v20, %v422_v58  ;;  %v195_v31 = vadd.f32 %v1180_v38, %v171_v24  ;;  %v194_v57 = vadd.f32 %v1180_v38, %v170_v23 }
 0x216   :  { %v237_v58 = vadd.f32 %v229_v30, %v197_v47  ;;  %v192_v3 = vadd.f32 %v1178_v37, %v168_v10  ;;  %v308_v38 = vmul.f32 %v1240_v19, %v1194_v49  ;;  %v266_v54 = vmul.f32 %v1220_v6, %v246_v1  ;;  %v348_v47 = vpop.permute.xlu0 %347 }
 0x217   :  { %v1281_v35 = vadd.f32 %v461_v11, %v445_v26  ;;  %v1283_v44 = vadd.f32 %v462_v13, %v446_v40  ;;  %v286_v36 = vpop.permute.xlu1 %285  ;;  %v910_v63 = vpop.eup %909  ;;  %v224_v11 = vmul.f32 %v1210_v61, %v202_v2  ;;  %v234_v0 = vadd.f32 %v226_v12, %v194_v57 }
 0x218   :  { %v463_v39 = vmul.f32 %v1188_v45, %v286_v36  ;;  %v464_v42 = vmul.f32 %v1191_v46, %v286_v36  ;;  %v227_v46 = vmul.f32 %v1217_v5, %v1170_v32  ;;  %v912_v32 = vpop.eup %911  ;;  %v276_v20 = vadd.f32 %v268_v33, %v236_v4 }
 0x219   :  { %v277_v37 = vadd.f32 %v269_v59, %v237_v58  ;;  %v265_v61 = vmul.f32 %v1229_v48, %v242_v62  ;;  %v232_v2 = vadd.f32 %v224_v11, %v192_v3  ;;  %v264_v25 = vmul.f32 %v1220_v6, %v242_v62 }
 0x21a   :  { %v1299_v56 = vadd.f32 %v463_v39, %v447_v41  ;;  %v1303_v45 = vadd.f32 %v464_v42, %v448_v28  ;;  %v235_v13 = vadd.f32 %v227_v46, %v195_v31  ;;  %v307_v49 = vmul.f32 %v1247_v53, %v286_v36 }
 0x21b   :  { %v274_v28 = vadd.f32 %v266_v54, %v234_v0  ;;  %v306_v23 = vmul.f32 %v1240_v19, %v286_v36  ;;  %v316_v1 = vadd.f32 %v308_v38, %v276_v20  ;;  %v305_v24 = vmul.f32 %v1247_v53, %v1267_v7 }
 0x21c   :  { %v1308_v18 = vpop.permute.xlu1 %352  ;;  %v275_v41 = vadd.f32 %v267_v16, %v235_v13  ;;  %v273_v39 = vadd.f32 %v265_v61, %v233_v21  ;;  %v317_v42 = vadd.f32 %v309_v15, %v277_v37  ;;  %v304_v48 = vmul.f32 %v1240_v19, %v1267_v7 }
 0x21d   :  { %v272_v6 = vadd.f32 %v264_v25, %v232_v2  ;;  %v314_v14 = vadd.f32 %v306_v23, %v274_v28  ;;  %913 = vtanh.f32 %v316_v1 }
 0x21e   :  { %v315_v62 = vadd.f32 %v307_v49, %v275_v41  ;;  %v313_v30 = vadd.f32 %v305_v24, %v273_v39  ;;  %915 = vtanh.f32 %v317_v42 }
 0x21f   :  { %v312_v43 = vadd.f32 %v304_v48, %v272_v6 }
 0x220   :  { %v363_v17 = vpop.permute.xlu1 %362  ;;  %917 = vtanh.f32 %v315_v62 }
 0x221   :  { %v371_v5 = vmul.f32 %v910_v63, %v363_v17  ;;  %v372_v52 = vmul.f32 %v912_v32, %v363_v17  ;;  %919 = vtanh.f32 %v314_v14  ;;  %v553_v32 = vld [vmem:[%s1374_s3] sm:$0xf]  ;;  %s984_s3 = smov 1  }
 0x222   :  { %921 = vtanh.f32 %v313_v30 }
 0x223   :  { %v380_v26 = vmax.f32 %v372_v52, 0.0  ;;  %v379_v40 = vmax.f32 %v371_v5, 0.0  ;;  %923 = vtanh.f32 %v312_v43 }
 0x224   :  { %925 = vtanh.f32 %v1249_v22 }
 0x225   :  { %582 = vmatprep.subr.mxu1 %v380_v26  ;;  %927 = vtanh.f32 %v1254_v29 }
 0x226   :  { %583 = vmatpush1.msra.mxu1 %v379_v40  ;;  %929 = vtanh.f32 %v1224_v8 }
 0x227   :  { %931 = vtanh.f32 %v1226_v9 }
 0x228   :  { %933 = vtanh.f32 %v1303_v45 }
 0x229   :  { %935 = vtanh.f32 %v1299_v56 }
 0x22a   :  { %v914_v36 = vpop.eup %913  ;;  %937 = vtanh.f32 %v1281_v35 }
 0x22b   :  { %v916_v53 = vpop.eup %915  ;;  %939 = vtanh.f32 %v1283_v44 }
 0x22d   :  { %v918_v55 = vpop.eup %917 }
 0x22e   :  { %v920_v10 = vpop.eup %919  ;;  %v368_v19 = vmul.f32 %v918_v55, %v1308_v18 }
 0x22f   :  { %v922_v46 = vpop.eup %921  ;;  %v367_v4 = vmul.f32 %v920_v10, %v1308_v18 }
 0x230   :  { %v924_v12 = vpop.eup %923  ;;  %v366_v33 = vmul.f32 %v922_v46, %v348_v47  ;;  %v376_v27 = vmax.f32 %v368_v19, 0.0 }
 0x231   :  { %v365_v59 = vmul.f32 %v924_v12, %v348_v47  ;;  %v375_v63 = vmax.f32 %v367_v4, 0.0  ;;  %v926_v18 = vpop.eup %925 }
 0x232   :  { %v374_v3 = vmax.f32 %v366_v33, 0.0  ;;  %v928_v13 = vpop.eup %927 }
 0x233   :  { %v373_v11 = vmax.f32 %v365_v59, 0.0  ;;  %v930_v22 = vpop.eup %929 }
 0x234   :  { %v932_v29 = vpop.eup %931 }
 0x235   :  { %v934_v54 = vpop.eup %933 }
 0x236   :  { %v936_v5 = vpop.eup %935 }
 0x237   :  { %v938_v44 = vpop.eup %937 }
 0x238   :  { %v940_v21 = vpop.eup %939 }
 0x23b   :  { %v358_v31 = vpop.permute.xlu0 %357 }
 0x23c   :  { %v369_v7 = vmul.f32 %v914_v36, %v358_v31  ;;  %v370_v57 = vmul.f32 %v916_v53, %v358_v31 }
 0x23e   :  { %v377_v58 = vmax.f32 %v369_v7, 0.0  ;;  %v378_v60 = vmax.f32 %v370_v57, 0.0  ;;  %v982_v57 = vmov 5  }
 0x23f   :  { %898 = vset.pattern.permute.xlu1 %v982_v57 }
 0x240   :  { %584 = vmatprep.subr.mxu1 %v378_v60 }
 0x241   :  { %585 = vmatpush1.msra.mxu1 %v377_v58 }
 0x242   :  { %586 = vmatprep.subr.mxu1 %v376_v27 }
 0x243   :  { %587 = vmatpush1.msra.mxu1 %v375_v63 }
 0x244   :  { %588 = vmatprep.subr.mxu1 %v374_v3 }
 0x245   :  { %589 = vmatpush1.msra.mxu1 %v373_v11  ;;  %v983_v11 = vmov 6  }
 0x246   :  { %842 = vmatmul.mubr.msk.f32.vlgmr.msra.gmra.mxu1 %vm554_vm3, %v553_v32  ;;  %900 = vset.pattern.permute.xlu0 %v983_v11 }
 0x252   :  { %v525_v17 = vpop.permute.xlu0 %524 }
 0x253   :  { %v540_v45 = vmul.f32 %v934_v54, %v525_v17  ;;  %v539_v35 = vmul.f32 %v936_v5, %v525_v17 }
 0x255   :  { %v548_v2 = vmax.f32 %v540_v45, 0.0  ;;  %v547_v40 = vmax.f32 %v539_v35, 0.0 }
 0x25a   :  { %v535_v38 = vpop.permute.xlu1 %534 }
 0x25b   :  { %v543_v15 = vmul.f32 %v926_v18, %v535_v38  ;;  %v544_v16 = vmul.f32 %v928_v13, %v535_v38 }
 0x25d   :  { %v551_v0 = vmax.f32 %v543_v15, 0.0  ;;  %v552_v8 = vmax.f32 %v544_v16, 0.0 }
 0x25e   :  { %v530_v9 = vpop.permute.xlu1 %529 }
 0x25f   :  { %v541_v52 = vmul.f32 %v930_v22, %v530_v9  ;;  %v542_v56 = vmul.f32 %v932_v29, %v530_v9  ;;  %653 = vmatprep.subr.mxu0 %v552_v8 }
 0x260   :  { %654 = vmatpush1.msra.mxu0 %v551_v0 }
 0x261   :  { %v549_v20 = vmax.f32 %v541_v52, 0.0  ;;  %v550_v37 = vmax.f32 %v542_v56, 0.0 }
 0x262   :  { %v520_v61 = vpop.permute.xlu1 %519 }
 0x263   :  { %v537_v25 = vmul.f32 %v938_v44, %v520_v61  ;;  %v538_v26 = vmul.f32 %v940_v21, %v520_v61  ;;  %655 = vmatprep.subr.mxu0 %v550_v37 }
 0x264   :  { %656 = vmatpush1.msra.mxu0 %v549_v20 }
 0x265   :  { %v545_v41 = vmax.f32 %v537_v25, 0.0  ;;  %v546_v49 = vmax.f32 %v538_v26, 0.0  ;;  %657 = vmatprep.subr.mxu0 %v548_v2 }
 0x266   :  { %658 = vmatpush1.msra.mxu0 %v547_v40 }
 0x267   :  { %659 = vmatprep.subr.mxu0 %v546_v49 }
 0x268   :  { %660 = vmatpush1.msra.mxu0 %v545_v41 }
 0x269   :  { %843 = vmatmul.mubr.msk.f32.vlgmr.msra.gmra.mxu0 %vm554_vm3, %v553_v32 }
 0x306   :  { %v624_v28 = vpop.f32.mrf.mxu1 }
 0x307   :  { %v710_v1 = vmul.f32 %v624_v28, %v624_v28  ;;  %v701_v39 = vsel %vm700_vm4, %v624_v28, 0.0 }
 0x308   :  { %v626_v23 = vpop.f32.mrf.mxu1 }
 0x309   :  { %v711_v24 = vmul.f32 %v626_v23, %v626_v23  ;;  %v702_v42 = vsel %vm700_vm4, %v626_v23, 0.0  ;;  %v714_v48 = vsel %vm700_vm4, %v710_v1, 0.0 }
 0x30a   :  { %v703_v62 = vadd.f32 %v702_v42, %v701_v39 }
 0x30b   :  { %v715_v6 = vsel %vm700_vm4, %v711_v24, 0.0 }
 0x30c   :  { %v716_v36 = vadd.f32 %v715_v6, %v714_v48 }
 0x329   :  { %v695_v14 = vpop.f32.mrf.mxu0 }
 0x32a   :  { %v704_v30 = vsel %vm700_vm4, %v695_v14, 0.0  ;;  %v712_v43 = vmul.f32 %v695_v14, %v695_v14 }
 0x32b   :  { %v697_v47 = vpop.f32.mrf.mxu0  ;;  %v705_v53 = vadd.f32 %v704_v30, %v703_v62 }
 0x32c   :  { %v706_v55 = vsel %vm700_vm4, %v697_v47, 0.0  ;;  %v713_v10 = vmul.f32 %v697_v47, %v697_v47  ;;  %v717_v46 = vsel %vm700_vm4, %v712_v43, 0.0 }
 0x32d   :  { %v707_v31 = vadd.f32 %v706_v55, %v705_v53  ;;  %v718_v12 = vadd.f32 %v717_v46, %v716_v36 }
 0x32e   :  { %v719_v19 = vsel %vm700_vm4, %v713_v10, 0.0 }
 0x32f   :  { %708 = vadd.xlane.f32.xlu1 %v707_v31  ;;  %v720_v7 = vadd.f32 %v719_v19, %v718_v12 }
 0x331   :  { %721 = vadd.xlane.f32.xlu0 %v720_v7 }
 0x3b8   :  { %v709_v4 = vpop.xlane.xlu1 %708 }
 0x3b9   :  { %v723_v58 = vmul.f32 0.001953125, %v709_v4 }
 0x3ba   :  { %v722_v60 = vpop.xlane.xlu0 %721 }
 0x3bb   :  { %v725_v33 = vmul.f32 %v723_v58, %v723_v58  ;;  %v724_v59 = vmul.f32 0.001953125, %v722_v60 }
 0x3bd   :  { %v726_v27 = vsub.f32 %v724_v59, %v725_v33 }
 0x3bf   :  { %v727_v63 = vmax.f32 %v726_v27, 0.0 }
 0x3c1   :  { %v728_v3 = vadd.f32 1e-05, %v727_v63 }
 0x3c3   :  { %941 = vrsqrt.f32 %v728_v3 }
 0x3d0   :  { %v942_v32 = vpop.eup %941 }
 0x3d1   :  { %v730_v18 = vmul.f32 %v942_v32, %v1079_v34 }
 0x3d3   :  { %739 = vperm.xlu1 %898, %v730_v18   ;;  %v731_v13 = vmul.f32 %v730_v18, %v723_v58 }
 0x3d5   :  { %733 = vrot.lane.b32.xlu0 %v731_v13, %s984_s3 }
 0x3d7   :  { %899 = vset.pattern.permute.xlu1 %v983_v11 }
 0x447   :  { %v734_v38 = vpop.permute.xlu0 %733 }
 0x448   :  { %v736_v15 = vsub.f32 %v1079_v34, %v734_v38 }
 0x44a   :  { %746 = vperm.xlu1 %899, %v736_v15  }
 0x44e   :  { %v740_v16 = vpop.permute.xlu1 %739 }
 0x44f   :  { %v742_v22 = vmul.f32 %v740_v16, %v624_v28  ;;  %v743_v17 = vmul.f32 %v740_v16, %v626_v23  ;;  %v779_v29 = vmul.f32 %v740_v16, %v695_v14  ;;  %v780_v0 = vmul.f32 %v740_v16, %v697_v47 }
 0x4c5   :  { %v747_v8 = vpop.permute.xlu1 %746 }
 0x4c6   :  { %v749_v54 = vadd.f32 %v747_v8, %v742_v22  ;;  %v750_v9 = vadd.f32 %v747_v8, %v743_v17  ;;  %v781_v5 = vadd.f32 %v779_v29, %v747_v8  ;;  %v782_v45 = vadd.f32 %v780_v0, %v747_v8 }
 0x4c8   :  { %v751_v52 = vmax.f32 %v749_v54, 0.0  ;;  %v752_v56 = vmax.f32 %v750_v9, 0.0  ;;  %v783_v35 = vmax.f32 %v781_v5, 0.0  ;;  %v784_v44 = vmax.f32 %v782_v45, 0.0 }
 0x4ca   :  { %v753_v20 = vadd.f32 %v751_v52, %v1105_v50  ;;  %v754_v37 = vadd.f32 %v752_v56, %v1110_v51  ;;  %v787_v34 = vrot.slane %v783_v35, 4  ;;  %v788_v21 = vrot.slane %v784_v44, 4 }
 0x4cc   :  { %v755_v61 = vmul.f32 %v753_v20, %v753_v20  ;;  %v756_v2 = vmul.f32 %v754_v37, %v754_v37  ;;  %v791_v25 = vadd.f32 %v787_v34, %v1105_v50  ;;  %v792_v26 = vadd.f32 %v788_v21, %v1110_v51 }
 0x4ce   :  { %v757_v40 = vsel %vm700_vm4, %v755_v61, 0.0  ;;  %v764_v41 = vsel %vm700_vm4, %v756_v2, 0.0  ;;  %v793_v49 = vmul.f32 %v791_v25, %v791_v25  ;;  %v794_v28 = vmul.f32 %v792_v26, %v792_v26 }
 0x4cf   :  { %v758_v23 = vrot.slane %v757_v40, 4  ;;  %v765_v1 = vrot.slane %v764_v41, 4 }
 0x4d0   :  { %v797_v24 = vrot.slane %v793_v49, 4  ;;  %v798_v39 = vrot.slane %v794_v28, 4 }
 0x4d1   :  { %v759_v42 = vadd.f32 %v758_v23, %v757_v40  ;;  %v766_v48 = vadd.f32 %v765_v1, %v764_v41 }
 0x4d2   :  { %v801_v6 = vsel %vm700_vm4, %v797_v24, 0.0  ;;  %v808_v62 = vsel %vm700_vm4, %v798_v39, 0.0 }
 0x4d3   :  { %v760_v14 = vrot.slane %v759_v42, 2  ;;  %v767_v50 = vrot.slane %v766_v48, 2  ;;  %v802_v30 = vrot.slane %v801_v6, 4  ;;  %v809_v51 = vrot.slane %v808_v62, 4 }
 0x4d5   :  { %v761_v43 = vadd.f32 %v760_v14, %v759_v42  ;;  %v768_v36 = vadd.f32 %v767_v50, %v766_v48  ;;  %v803_v47 = vadd.f32 %v802_v30, %v801_v6  ;;  %v810_v53 = vadd.f32 %v809_v51, %v808_v62 }
 0x4d7   :  { %v762_v55 = vrot.slane %v761_v43, 1  ;;  %v769_v10 = vrot.slane %v768_v36, 1  ;;  %v804_v46 = vrot.slane %v803_v47, 2  ;;  %v811_v31 = vrot.slane %v810_v53, 2 }
 0x4d9   :  { %v763_v12 = vadd.f32 %v762_v55, %v761_v43  ;;  %v770_v19 = vadd.f32 %v769_v10, %v768_v36  ;;  %v805_v7 = vadd.f32 %v804_v46, %v803_v47  ;;  %v812_v57 = vadd.f32 %v811_v31, %v810_v53 }
 0x4db   :  { %v771_v4 = vmax.f32 %v763_v12, 1e-24  ;;  %v772_v58 = vmax.f32 %v770_v19, 1e-24  ;;  %v806_v60 = vrot.slane %v805_v7, 1  ;;  %v813_v33 = vrot.slane %v812_v57, 1 }
 0x4dd   :  { %943 = vrsqrt.f32 %v771_v4  ;;  %v807_v59 = vadd.f32 %v806_v60, %v805_v7  ;;  %v814_v27 = vadd.f32 %v813_v33, %v812_v57 }
 0x4de   :  { %945 = vrsqrt.f32 %v772_v58 }
 0x4df   :  { %v815_v63 = vmax.f32 %v807_v59, 1e-24  ;;  %v816_v3 = vmax.f32 %v814_v27, 1e-24 }
 0x4e1   :  { %947 = vrsqrt.f32 %v815_v63 }
 0x4e2   :  { %949 = vrsqrt.f32 %v816_v3 }
 0x4ea   :  { %v944_v11 = vpop.eup %943 }
 0x4eb   :  { %v946_v32 = vpop.eup %945  ;;  %v775_v18 = vmul.f32 %v944_v11, %v753_v20 }
 0x4ec   :  { %v776_v13 = vmul.f32 %v946_v32, %v754_v37 }
 0x4ed   :  { %777 = vst [vmem:[#allocation2] sm:$0xf] %v775_v18 }
 0x4ee   :  { %v948_v38 = vpop.eup %947  ;;  %778 = vst [vmem:[#allocation2 + $0x8] sm:$0xf] %v776_v13 }
 0x4ef   :  { %v950_v15 = vpop.eup %949  ;;  %v819_v16 = vmul.f32 %v948_v38, %v791_v25 }
 0x4f0   :  { %v820_v22 = vmul.f32 %v950_v15, %v792_v26 }
 0x4f1   :  { %821 = vst [vmem:[#allocation2] sm:$0xf0] %v819_v16 }
 0x4f2   :  { %822 = vst [vmem:[#allocation2 + $0x8] sm:$0xf0] %v820_v22 }
 0x4f3   :  { %962 = shalt.err (!%p959_p4)
}
 0x4f4   :  { %832 = dma.vmem_to_hbm [thread:$0]  %s830_s19, 256, %s1376_s5, [#allocation3]  }
 0x4f5   :  { %971 = dma.done.wait [#allocation3], 256  }
 0x4f6   :  { %972 = vsyncadd [#allocation3], 4294967040 }
 0x4f7   :  { %836 = vsyncpa [#allocation3], 1 }

</bundles_post_ra>
